<compile_context>
chip_gen: v7x
topology: tpu7x:2x2x1
jax: 0.10.0
libtpu: 0.0.40
codegen_flags: <defaults>
</compile_context>

<pallas_src>
import functools

import jax
import jax.numpy as jnp
from jax.experimental import pallas as pl
from jax.experimental.pallas import tpu as pltpu

input_size = 3
hidden_size = 5
output_size = 1

LANES = 128  # lane width of a vreg; batch tiles are multiples of this

# Flat parameter layout (f32[N_PARAMS], lives in SMEM inside the kernel):
#   [W1_OFF, B1_OFF) : w1, row-major (input_size, hidden_size) -> w1[k, j] at k*hidden_size + j
#   [B1_OFF, W2_OFF) : b1 (hidden_size,)
#   [W2_OFF, B2_OFF) : w2, row-major (hidden_size, output_size) -> w2[j, o] at j*output_size + o
#   [B2_OFF, ...)    : b2 (output_size,)
W1_OFF = 0
B1_OFF = W1_OFF + input_size * hidden_size
W2_OFF = B1_OFF + hidden_size
B2_OFF = W2_OFF + hidden_size * output_size
N_PARAMS = B2_OFF + output_size


def mlp_kernel(x_ref, p_ref, o_ref):
    # x_ref: (input_size, TB) VMEM tile -- batch on the lane axis (fully dense).
    # p_ref: (N_PARAMS,) f32 in SMEM -- weights/biases read as scalars.
    # o_ref: (output_size, TB) VMEM tile -- lane-dense output, unmasked stores.
    x = x_ref[...].astype(jnp.float32)  # free upcast if HBM-side x is bf16

    # fc1 + ReLU: h[j, :] = relu(b1[j] + sum_k w1[k, j] * x[k, :])
    hs = []
    for j in range(hidden_size):
        h = x[0:1, :] * p_ref[W1_OFF + j] + p_ref[B1_OFF + j]
        for k in range(1, input_size):
            h = h + x[k:k + 1, :] * p_ref[W1_OFF + k * hidden_size + j]
        hs.append(jnp.maximum(h, 0.0))

    # fc2: y[o, :] = b2[o] + sum_j w2[j, o] * h[j, :]
    for o in range(output_size):
        y = hs[0] * p_ref[W2_OFF + o] + p_ref[B2_OFF + o]
        for j in range(1, hidden_size):
            y = y + hs[j] * p_ref[W2_OFF + j * output_size + o]
        o_ref[o:o + 1, :] = y.astype(o_ref.dtype)


def pack_params(w1, b1, w2, b2):
    """Flatten all parameters into one f32[N_PARAMS] array (SMEM-resident in-kernel)."""
    p = jnp.concatenate([
        w1.reshape(-1).astype(jnp.float32),   # (input_size * hidden_size,)
        b1.reshape(-1).astype(jnp.float32),   # (hidden_size,)
        w2.reshape(-1).astype(jnp.float32),   # (hidden_size * output_size,)
        b2.reshape(-1).astype(jnp.float32),   # (output_size,)
    ])
    assert p.shape == (N_PARAMS,)
    return p


def _round_up(n, m):
    return ((n + m - 1) // m) * m


@functools.partial(jax.jit, static_argnames=("block_b",))
def mynn_forward(x, params_flat, *, block_b=1024):
    """x: (B, input_size); params_flat: (N_PARAMS,) f32. Returns (B, output_size)."""
    B = x.shape[0]
    # Lane-dense batch tile: multiples of 128, capped at block_b, shrunk for tiny B.
    bb = min(block_b, _round_up(B, LANES))
    padded_b = _round_up(B, bb)
    grid = (padded_b // bb,)

    # Batch-on-lanes layout: (input_size, padded_b). Pad tail rows with zeros.
    xp = jnp.zeros((padded_b, input_size), x.dtype).at[:B, :].set(x)
    x_t = xp.T

    y_t = pl.pallas_call(
        mlp_kernel,
        out_shape=jax.ShapeDtypeStruct((output_size, padded_b), x.dtype),
        grid=grid,
        in_specs=[
            pl.BlockSpec((input_size, bb), lambda i: (0, i)),   # x tile (VMEM, streamed)
            pl.BlockSpec(memory_space=pltpu.SMEM),              # params as SMEM scalars
        ],
        out_specs=pl.BlockSpec((output_size, bb), lambda i: (0, i)),
        compiler_params=pltpu.CompilerParams(
            dimension_semantics=("parallel",),   # lets v7x shard batch tiles across both TCs
        ),
    )(x_t, params_flat)

    return y_t[:, :B].T  # back to (B, output_size)


def init_params(key):
    """Deterministic init mimicking PyTorch nn.Linear default (uniform +/- 1/sqrt(fan_in))."""
    k1, k2, k3, k4 = jax.random.split(key, 4)
    bound1 = 1.0 / jnp.sqrt(jnp.float32(input_size))
    bound2 = 1.0 / jnp.sqrt(jnp.float32(hidden_size))
    # Stored transposed relative to PyTorch's (out, in) weight layout: y = x @ w + b.
    w1 = jax.random.uniform(k1, (input_size, hidden_size), jnp.float32, -bound1, bound1)
    b1 = jax.random.uniform(k2, (hidden_size,), jnp.float32, -bound1, bound1)
    w2 = jax.random.uniform(k3, (hidden_size, output_size), jnp.float32, -bound2, bound2)
    b2 = jax.random.uniform(k4, (output_size,), jnp.float32, -bound2, bound2)
    return w1, b1, w2, b2


if __name__ == "__main__":
    key = jax.random.PRNGKey(0)
    kx, kp = jax.random.split(key)
    batch = 8  # tiny demo batch; kernel scales to large B via the batch grid
    x = jax.random.normal(kx, (batch, input_size), dtype=jnp.float32)
    w1, b1, w2, b2 = init_params(kp)

    params = pack_params(w1, b1, w2, b2)  # one-time flat packing (outside the kernel)
    out = mynn_forward(x, params)
    out = jax.block_until_ready(out)

    # Pure-JAX reference check against the unpacked parameters.
    ref = jnp.maximum(x @ w1 + b1[None, :], 0.0) @ w2 + b2[None, :]
    assert out.shape == (batch, output_size)
    assert jnp.allclose(out, ref, atol=1e-5), "mismatch vs reference"

    print("KERNEL_OK")
</pallas_src>

<mosaic_0001>
module attributes {stable_mosaic.version = 11 : i64} {
  func.func @mlp_kernel(%arg0: i32, %arg1: memref<3x128xf32, #tpu.memory_space<vmem>>, %arg2: memref<26xf32, #tpu.memory_space<smem>>, %arg3: memref<1x128xf32, #tpu.memory_space<vmem>>) attributes {dimension_semantics = [#tpu.dimension_semantics<parallel>], iteration_bounds = array<i64: 1>, scalar_prefetch = 0 : i64, scratch_operands = 0 : i64, tpu.core_type = #tpu.core_type<tc>, window_params = [{transform_indices = @transform_0, window_bounds = array<i64: 3, 128>}, {transform_indices = @transform_1, window_bounds = array<i64: 26>}, {transform_indices = @transform_2, window_bounds = array<i64: 1, 128>}]} {
    %c0 = arith.constant 0 : index
    %c0_0 = arith.constant 0 : index
    %0 = vector.load %arg1[%c0, %c0_0] : memref<3x128xf32, #tpu.memory_space<vmem>>, vector<3x128xf32>
    %1 = vector.extract_strided_slice %0 {offsets = [0, 0], sizes = [1, 128], strides = [1, 1]} : vector<3x128xf32> to vector<1x128xf32>
    %c0_1 = arith.constant 0 : index
    %2 = memref.load %arg2[%c0_1] : memref<26xf32, #tpu.memory_space<smem>>
    %3 = vector.broadcast %2 : f32 to vector<1x128xf32>
    %4 = arith.mulf %1, %3 : vector<1x128xf32>
    %c15 = arith.constant 15 : index
    %5 = memref.load %arg2[%c15] : memref<26xf32, #tpu.memory_space<smem>>
    %6 = vector.broadcast %5 : f32 to vector<1x128xf32>
    %7 = arith.addf %4, %6 : vector<1x128xf32>
    %8 = vector.extract_strided_slice %0 {offsets = [1, 0], sizes = [1, 128], strides = [1, 1]} : vector<3x128xf32> to vector<1x128xf32>
    %c5 = arith.constant 5 : index
    %9 = memref.load %arg2[%c5] : memref<26xf32, #tpu.memory_space<smem>>
    %10 = vector.broadcast %9 : f32 to vector<1x128xf32>
    %11 = arith.mulf %8, %10 : vector<1x128xf32>
    %12 = arith.addf %7, %11 : vector<1x128xf32>
    %13 = vector.extract_strided_slice %0 {offsets = [2, 0], sizes = [1, 128], strides = [1, 1]} : vector<3x128xf32> to vector<1x128xf32>
    %c10 = arith.constant 10 : index
    %14 = memref.load %arg2[%c10] : memref<26xf32, #tpu.memory_space<smem>>
    %15 = vector.broadcast %14 : f32 to vector<1x128xf32>
    %16 = arith.mulf %13, %15 : vector<1x128xf32>
    %17 = arith.addf %12, %16 : vector<1x128xf32>
    %cst = arith.constant 0.000000e+00 : f32
    %18 = vector.broadcast %cst : f32 to vector<1x128xf32>
    %19 = arith.maximumf %17, %18 : vector<1x128xf32>
    %20 = vector.extract_strided_slice %0 {offsets = [0, 0], sizes = [1, 128], strides = [1, 1]} : vector<3x128xf32> to vector<1x128xf32>
    %c1 = arith.constant 1 : index
    %21 = memref.load %arg2[%c1] : memref<26xf32, #tpu.memory_space<smem>>
    %22 = vector.broadcast %21 : f32 to vector<1x128xf32>
    %23 = arith.mulf %20, %22 : vector<1x128xf32>
    %c16 = arith.constant 16 : index
    %24 = memref.load %arg2[%c16] : memref<26xf32, #tpu.memory_space<smem>>
    %25 = vector.broadcast %24 : f32 to vector<1x128xf32>
    %26 = arith.addf %23, %25 : vector<1x128xf32>
    %27 = vector.extract_strided_slice %0 {offsets = [1, 0], sizes = [1, 128], strides = [1, 1]} : vector<3x128xf32> to vector<1x128xf32>
    %c6 = arith.constant 6 : index
    %28 = memref.load %arg2[%c6] : memref<26xf32, #tpu.memory_space<smem>>
    %29 = vector.broadcast %28 : f32 to vector<1x128xf32>
    %30 = arith.mulf %27, %29 : vector<1x128xf32>
    %31 = arith.addf %26, %30 : vector<1x128xf32>
    %32 = vector.extract_strided_slice %0 {offsets = [2, 0], sizes = [1, 128], strides = [1, 1]} : vector<3x128xf32> to vector<1x128xf32>
    %c11 = arith.constant 11 : index
    %33 = memref.load %arg2[%c11] : memref<26xf32, #tpu.memory_space<smem>>
    %34 = vector.broadcast %33 : f32 to vector<1x128xf32>
    %35 = arith.mulf %32, %34 : vector<1x128xf32>
    %36 = arith.addf %31, %35 : vector<1x128xf32>
    %cst_2 = arith.constant 0.000000e+00 : f32
    %37 = vector.broadcast %cst_2 : f32 to vector<1x128xf32>
    %38 = arith.maximumf %36, %37 : vector<1x128xf32>
    %39 = vector.extract_strided_slice %0 {offsets = [0, 0], sizes = [1, 128], strides = [1, 1]} : vector<3x128xf32> to vector<1x128xf32>
    %c2 = arith.constant 2 : index
    %40 = memref.load %arg2[%c2] : memref<26xf32, #tpu.memory_space<smem>>
    %41 = vector.broadcast %40 : f32 to vector<1x128xf32>
    %42 = arith.mulf %39, %41 : vector<1x128xf32>
    %c17 = arith.constant 17 : index
    %43 = memref.load %arg2[%c17] : memref<26xf32, #tpu.memory_space<smem>>
    %44 = vector.broadcast %43 : f32 to vector<1x128xf32>
    %45 = arith.addf %42, %44 : vector<1x128xf32>
    %46 = vector.extract_strided_slice %0 {offsets = [1, 0], sizes = [1, 128], strides = [1, 1]} : vector<3x128xf32> to vector<1x128xf32>
    %c7 = arith.constant 7 : index
    %47 = memref.load %arg2[%c7] : memref<26xf32, #tpu.memory_space<smem>>
    %48 = vector.broadcast %47 : f32 to vector<1x128xf32>
    %49 = arith.mulf %46, %48 : vector<1x128xf32>
    %50 = arith.addf %45, %49 : vector<1x128xf32>
    %51 = vector.extract_strided_slice %0 {offsets = [2, 0], sizes = [1, 128], strides = [1, 1]} : vector<3x128xf32> to vector<1x128xf32>
    %c12 = arith.constant 12 : index
    %52 = memref.load %arg2[%c12] : memref<26xf32, #tpu.memory_space<smem>>
    %53 = vector.broadcast %52 : f32 to vector<1x128xf32>
    %54 = arith.mulf %51, %53 : vector<1x128xf32>
    %55 = arith.addf %50, %54 : vector<1x128xf32>
    %cst_3 = arith.constant 0.000000e+00 : f32
    %56 = vector.broadcast %cst_3 : f32 to vector<1x128xf32>
    %57 = arith.maximumf %55, %56 : vector<1x128xf32>
    %58 = vector.extract_strided_slice %0 {offsets = [0, 0], sizes = [1, 128], strides = [1, 1]} : vector<3x128xf32> to vector<1x128xf32>
    %c3 = arith.constant 3 : index
    %59 = memref.load %arg2[%c3] : memref<26xf32, #tpu.memory_space<smem>>
    %60 = vector.broadcast %59 : f32 to vector<1x128xf32>
    %61 = arith.mulf %58, %60 : vector<1x128xf32>
    %c18 = arith.constant 18 : index
    %62 = memref.load %arg2[%c18] : memref<26xf32, #tpu.memory_space<smem>>
    %63 = vector.broadcast %62 : f32 to vector<1x128xf32>
    %64 = arith.addf %61, %63 : vector<1x128xf32>
    %65 = vector.extract_strided_slice %0 {offsets = [1, 0], sizes = [1, 128], strides = [1, 1]} : vector<3x128xf32> to vector<1x128xf32>
    %c8 = arith.constant 8 : index
    %66 = memref.load %arg2[%c8] : memref<26xf32, #tpu.memory_space<smem>>
    %67 = vector.broadcast %66 : f32 to vector<1x128xf32>
    %68 = arith.mulf %65, %67 : vector<1x128xf32>
    %69 = arith.addf %64, %68 : vector<1x128xf32>
    %70 = vector.extract_strided_slice %0 {offsets = [2, 0], sizes = [1, 128], strides = [1, 1]} : vector<3x128xf32> to vector<1x128xf32>
    %c13 = arith.constant 13 : index
    %71 = memref.load %arg2[%c13] : memref<26xf32, #tpu.memory_space<smem>>
    %72 = vector.broadcast %71 : f32 to vector<1x128xf32>
    %73 = arith.mulf %70, %72 : vector<1x128xf32>
    %74 = arith.addf %69, %73 : vector<1x128xf32>
    %cst_4 = arith.constant 0.000000e+00 : f32
    %75 = vector.broadcast %cst_4 : f32 to vector<1x128xf32>
    %76 = arith.maximumf %74, %75 : vector<1x128xf32>
    %77 = vector.extract_strided_slice %0 {offsets = [0, 0], sizes = [1, 128], strides = [1, 1]} : vector<3x128xf32> to vector<1x128xf32>
    %c4 = arith.constant 4 : index
    %78 = memref.load %arg2[%c4] : memref<26xf32, #tpu.memory_space<smem>>
    %79 = vector.broadcast %78 : f32 to vector<1x128xf32>
    %80 = arith.mulf %77, %79 : vector<1x128xf32>
    %c19 = arith.constant 19 : index
    %81 = memref.load %arg2[%c19] : memref<26xf32, #tpu.memory_space<smem>>
    %82 = vector.broadcast %81 : f32 to vector<1x128xf32>
    %83 = arith.addf %80, %82 : vector<1x128xf32>
    %84 = vector.extract_strided_slice %0 {offsets = [1, 0], sizes = [1, 128], strides = [1, 1]} : vector<3x128xf32> to vector<1x128xf32>
    %c9 = arith.constant 9 : index
    %85 = memref.load %arg2[%c9] : memref<26xf32, #tpu.memory_space<smem>>
    %86 = vector.broadcast %85 : f32 to vector<1x128xf32>
    %87 = arith.mulf %84, %86 : vector<1x128xf32>
    %88 = arith.addf %83, %87 : vector<1x128xf32>
    %89 = vector.extract_strided_slice %0 {offsets = [2, 0], sizes = [1, 128], strides = [1, 1]} : vector<3x128xf32> to vector<1x128xf32>
    %c14 = arith.constant 14 : index
    %90 = memref.load %arg2[%c14] : memref<26xf32, #tpu.memory_space<smem>>
    %91 = vector.broadcast %90 : f32 to vector<1x128xf32>
    %92 = arith.mulf %89, %91 : vector<1x128xf32>
    %93 = arith.addf %88, %92 : vector<1x128xf32>
    %cst_5 = arith.constant 0.000000e+00 : f32
    %94 = vector.broadcast %cst_5 : f32 to vector<1x128xf32>
    %95 = arith.maximumf %93, %94 : vector<1x128xf32>
    %c20 = arith.constant 20 : index
    %96 = memref.load %arg2[%c20] : memref<26xf32, #tpu.memory_space<smem>>
    %97 = vector.broadcast %96 : f32 to vector<1x128xf32>
    %98 = arith.mulf %19, %97 : vector<1x128xf32>
    %c25 = arith.constant 25 : index
    %99 = memref.load %arg2[%c25] : memref<26xf32, #tpu.memory_space<smem>>
    %100 = vector.broadcast %99 : f32 to vector<1x128xf32>
    %101 = arith.addf %98, %100 : vector<1x128xf32>
    %c21 = arith.constant 21 : index
    %102 = memref.load %arg2[%c21] : memref<26xf32, #tpu.memory_space<smem>>
    %103 = vector.broadcast %102 : f32 to vector<1x128xf32>
    %104 = arith.mulf %38, %103 : vector<1x128xf32>
    %105 = arith.addf %101, %104 : vector<1x128xf32>
    %c22 = arith.constant 22 : index
    %106 = memref.load %arg2[%c22] : memref<26xf32, #tpu.memory_space<smem>>
    %107 = vector.broadcast %106 : f32 to vector<1x128xf32>
    %108 = arith.mulf %57, %107 : vector<1x128xf32>
    %109 = arith.addf %105, %108 : vector<1x128xf32>
    %c23 = arith.constant 23 : index
    %110 = memref.load %arg2[%c23] : memref<26xf32, #tpu.memory_space<smem>>
    %111 = vector.broadcast %110 : f32 to vector<1x128xf32>
    %112 = arith.mulf %76, %111 : vector<1x128xf32>
    %113 = arith.addf %109, %112 : vector<1x128xf32>
    %c24 = arith.constant 24 : index
    %114 = memref.load %arg2[%c24] : memref<26xf32, #tpu.memory_space<smem>>
    %115 = vector.broadcast %114 : f32 to vector<1x128xf32>
    %116 = arith.mulf %95, %115 : vector<1x128xf32>
    %117 = arith.addf %113, %116 : vector<1x128xf32>
    %c0_6 = arith.constant 0 : index
    %c0_7 = arith.constant 0 : index
    %118 = vector.load %arg3[%c0_6, %c0_7] : memref<1x128xf32, #tpu.memory_space<vmem>>, vector<1x128xf32>
    tpu.vector_store %arg3[%c0_6, %c0_7], %117 {strides = array<i32>} : memref<1x128xf32, #tpu.memory_space<vmem>>, vector<1x128xf32>,
    return
  }
  func.func @transform_0(%arg0: i32) -> (i32, i32) {
    %c0_i32 = arith.constant 0 : i32
    %c0_i32_0 = arith.constant 0 : i32
    return %c0_i32, %arg0 : i32, i32
  }
  func.func @transform_1(%arg0: i32) -> i32 {
    %c0_i32 = arith.constant 0 : i32
    %c0_i32_0 = arith.constant 0 : i32
    return %c0_i32 : i32
  }
  func.func @transform_2(%arg0: i32) -> (i32, i32) {
    %c0_i32 = arith.constant 0 : i32
    %c0_i32_0 = arith.constant 0 : i32
    return %c0_i32, %arg0 : i32, i32
  }
}

</mosaic_0001>

<bundles_post_ra>
// kernel: mynn_forward.1
= control target key start
LH: loop header
LB: loop body
LE: loop exit
PB: predicated region body
PF: predicated region fallthrough
CT: control target
= control target key end

     0   :  { %7 = vsyncpa [#allocation3], 0  ;;  %s294_s0 = inlined_call_operand.vmem [shape: f32[3,128], index: 0, kind: input, shape index: {}]   ;;  %s295_s1 = inlined_call_operand.vmem [shape: f32[26], index: 1, kind: input, shape index: {}]   ;;  %s296_s2 = inlined_call_operand.vmem [shape: f32[1,128], index: 2, kind: output, shape index: {}]  }
   0x1   :  { %s16_s11 = sshll.u32 %s295_s1, 4  ;;  %s17_s11 = int_to_ptr.vmem [resolvable:$true] %s16_s11 }
   0x2   :  { %s184_s12 = scalar_lea.vmem %s17_s11, 16  ;;  %p189_p1 = scmp.lt.s32.totalorder %s17_s11, %s17_s11 }
   0x3   :  { %p185_p0 = scmp.ne.s32.totalorder %s17_s11, %s184_s12  ;;  %p190_p2 = scmp.lt.s32.totalorder %s184_s12, %s184_s12 }
   0x5   :  { %p191_p3 = por %p190_p2, %p189_p1 }
   0x7   :  { %p192_p4 = pnand %p191_p3, %p185_p0 }
   0x9   :  { %195 = shalt.err (!%p192_p4)
}
   0xa   :  { %s198_s13 = smov [#allocation2]  }
   0xb   :  { %19 = dma.vmem_to_smem %s17_s11, 16, %s198_s13, [#allocation3]  }
   0xc   :  { %196 = dma.done.wait [#allocation3], 16  }
   0xd   :  { %197 = vsyncadd [#allocation3], 4294967280 }
   0xe   :  { %23 = sfence }
   0xf   :  { %s25_s14 = sld [smem:[#allocation2]]  ;;  %s158_s15 = sld [smem:[#allocation2 + $0xf]]  ;;  %v222_v0 = vld [vmem:[%s294_s0] sm:$0x7] }
  0x10   :  { %s159_s16 = sld [smem:[#allocation2 + $0x5]]  ;;  %s160_s17 = sld [smem:[#allocation2 + $0xa]] }
  0x11   :  { %s161_s18 = sld [smem:[#allocation2 + $0x1]]  ;;  %s217_s19 = sld [smem:[#allocation2 + $0x10]] }
  0x12   :  { %s163_s1 = sld [smem:[#allocation2 + $0x6]]  ;;  %s164_s20 = sld [smem:[#allocation2 + $0xb]] }
  0x13   :  { %s224_s23 = sld [smem:[#allocation2 + $0x2]]  ;;  %s226_s24 = sld [smem:[#allocation2 + $0x11]] }
  0x14   :  { %s228_s25 = sld [smem:[#allocation2 + $0x7]]  ;;  %s230_s26 = sld [smem:[#allocation2 + $0xc]] }
  0x15   :  { %v26_v1 = vstv %s25_s14  ;;  %v29_v2 = vstv %s158_s15  ;;  %s232_s27 = sld [smem:[#allocation2 + $0x3]]  ;;  %s234_s28 = sld [smem:[#allocation2 + $0x12]] }
  0x16   :  { %v27_v3 = vmul.f32 %v26_v1, %v222_v0  ;;  %v32_v4 = vstv %s159_s16  ;;  %v39_v5 = vstv %s160_s17  ;;  %s237_s0 = sld [smem:[#allocation2 + $0x8]]  ;;  %s239_s29 = sld [smem:[#allocation2 + $0xd]] }
  0x17   :  { %v33_v6 = vmul.f32 %v32_v4, %v222_v0  ;;  %v40_v7 = vmul.f32 %v39_v5, %v222_v0  ;;  %v47_v8 = vstv %s161_s18  ;;  %v50_v9 = vstv %s217_s19  ;;  %s245_s30 = sld [smem:[#allocation2 + $0x4]]  ;;  %s249_s3 = sld [smem:[#allocation2 + $0x13]] }
  0x18   :  { %v30_v10 = vadd.f32 %v29_v2, %v27_v3  ;;  %v48_v11 = vmul.f32 %v47_v8, %v222_v0  ;;  %v53_v12 = vstv %s163_s1  ;;  %v60_v13 = vstv %s164_s20  ;;  %s254_s4 = sld [smem:[#allocation2 + $0x9]]  ;;  %s256_s5 = sld [smem:[#allocation2 + $0xe]] }
  0x19   :  { %v35_v14 = vrot.slane %v33_v6, 1  ;;  %v42_v15 = vrot.slane %v40_v7, 2  ;;  %v54_v16 = vmul.f32 %v53_v12, %v222_v0  ;;  %v61_v17 = vmul.f32 %v60_v13, %v222_v0  ;;  %s259_s6 = sld [smem:[#allocation2 + $0x14]]  ;;  %s265_s7 = sld [smem:[#allocation2 + $0x19]] }
  0x1a   :  { %v51_v18 = vadd.f32 %v50_v9, %v48_v11  ;;  %v68_v19 = vstv %s224_s23  ;;  %v71_v20 = vstv %s226_s24  ;;  %v74_v21 = vstv %s228_s25  ;;  %s267_s8 = sld [smem:[#allocation2 + $0x15]]  ;;  %s273_s9 = sld [smem:[#allocation2 + $0x16]] }
  0x1b   :  { %v37_v22 = vadd.f32 %v35_v14, %v30_v10  ;;  %v56_v23 = vrot.slane %v54_v16, 1  ;;  %v63_v24 = vrot.slane %v61_v17, 2  ;;  %v69_v25 = vmul.f32 %v68_v19, %v222_v0  ;;  %s275_s10 = sld [smem:[#allocation2 + $0x17]]  ;;  %s182_s11 = sld [smem:[#allocation2 + $0x18]] }
  0x1c   :  { %v75_v26 = vmul.f32 %v74_v21, %v222_v0  ;;  %v81_v27 = vstv %s230_s26  ;;  %v89_v28 = vstv %s232_s27  ;;  %v92_v29 = vstv %s234_s28 }
  0x1d   :  { %v44_v30 = vadd.f32 %v42_v15, %v37_v22  ;;  %v58_v31 = vadd.f32 %v56_v23, %v51_v18  ;;  %v72_v32 = vadd.f32 %v71_v20, %v69_v25  ;;  %v82_v33 = vmul.f32 %v81_v27, %v222_v0 }
  0x1e   :  { %v77_v34 = vrot.slane %v75_v26, 1  ;;  %v90_v35 = vmul.f32 %v89_v28, %v222_v0  ;;  %v95_v36 = vstv %s237_s0  ;;  %v102_v37 = vstv %s239_s29 }
  0x1f   :  { %v45_v38 = vmax.f32 %v44_v30, 0.0  ;;  %v65_v39 = vadd.f32 %v63_v24, %v58_v31  ;;  %v84_v40 = vrot.slane %v82_v33, 2  ;;  %v96_v41 = vmul.f32 %v95_v36, %v222_v0 }
  0x20   :  { %v79_v42 = vadd.f32 %v77_v34, %v72_v32  ;;  %v93_v43 = vadd.f32 %v92_v29, %v90_v35  ;;  %v103_v44 = vmul.f32 %v102_v37, %v222_v0  ;;  %v110_v45 = vstv %s245_s30 }
  0x21   :  { %v66_v46 = vmax.f32 %v65_v39, 0.0  ;;  %v98_v47 = vrot.slane %v96_v41, 1  ;;  %v111_v48 = vmul.f32 %v110_v45, %v222_v0  ;;  %v113_v49 = vstv %s249_s3 }
  0x22   :  { %v86_v50 = vadd.f32 %v84_v40, %v79_v42  ;;  %v105_v51 = vrot.slane %v103_v44, 2  ;;  %v116_v52 = vstv %s254_s4  ;;  %v123_v53 = vstv %s256_s5 }
  0x23   :  { %v100_v54 = vadd.f32 %v98_v47, %v93_v43  ;;  %v114_v55 = vadd.f32 %v113_v49, %v111_v48  ;;  %v117_v56 = vmul.f32 %v116_v52, %v222_v0  ;;  %v124_v57 = vmul.f32 %v123_v53, %v222_v0 }
  0x24   :  { %v87_v58 = vmax.f32 %v86_v50, 0.0  ;;  %v131_v59 = vstv %s259_s6  ;;  %v134_v60 = vstv %s265_s7  ;;  %v137_v61 = vstv %s267_s8 }
  0x25   :  { %v107_v62 = vadd.f32 %v105_v51, %v100_v54  ;;  %v119_v63 = vrot.slane %v117_v56, 1  ;;  %v126_v1 = vrot.slane %v124_v57, 2  ;;  %v132_v2 = vmul.f32 %v131_v59, %v45_v38 }
  0x26   :  { %v138_v3 = vmul.f32 %v137_v61, %v66_v46  ;;  %v141_v4 = vstv %s273_s9  ;;  %v145_v5 = vstv %s275_s10  ;;  %v149_v13 = vstv %s182_s11 }
  0x27   :  { %v108_v6 = vmax.f32 %v107_v62, 0.0  ;;  %v121_v7 = vadd.f32 %v119_v63, %v114_v55  ;;  %v135_v8 = vadd.f32 %v134_v60, %v132_v2  ;;  %v142_v9 = vmul.f32 %v141_v4, %v87_v58 }
  0x29   :  { %v128_v10 = vadd.f32 %v126_v1, %v121_v7  ;;  %v139_v11 = vadd.f32 %v138_v3, %v135_v8  ;;  %v146_v12 = vmul.f32 %v145_v5, %v108_v6 }
  0x2b   :  { %v129_v0 = vmax.f32 %v128_v10, 0.0  ;;  %v143_v14 = vadd.f32 %v142_v9, %v139_v11 }
  0x2d   :  { %v147_v15 = vadd.f32 %v146_v12, %v143_v14  ;;  %v150_v16 = vmul.f32 %v149_v13, %v129_v0 }
  0x2f   :  { %v151_v17 = vadd.f32 %v150_v16, %v147_v15 }
  0x31   :  { %152 = vst [vmem:[%s296_s2] sm:$0x1] %v151_v17 }
  0x32   :  { %157 = vsyncpa [#allocation3], 1 }

</bundles_post_ra>
